<compile_context>
chip_gen: v7x
topology: tpu7x:2x2x1
jax: 0.10.0
libtpu: 0.0.40
codegen_flags: <defaults>
</compile_context>

<pallas_src>
import jax
import jax.numpy as jnp
from jax.experimental import pallas as pl
from jax.experimental.pallas import tpu as pltpu

LANE = 128
SUBLANE = 8


def _round_up(x, m):
    return ((x + m - 1) // m) * m


def _physical_vmem_bytes():
    try:
        return int(pltpu.get_tpu_info().vmem_capacity_bytes)
    except Exception:
        return 64 << 20  # conservative fallback (v7x per-TC VMEM)


# --------------------------------------------------------------------------
# Kernel
# --------------------------------------------------------------------------
def _gru_kernel(x_ref, h_ref, wx_ref, whrz_ref, whh_ref, b_ref, o_ref):
    D = h_ref.shape[-1]          # padded feature dim (multiple of 128)
    wdt = wx_ref.dtype           # weight dtype (bf16 by default)

    # Cast activations to the weight dtype in-kernel (no separate XLA pass).
    x = x_ref[...].astype(wdt)
    h_f32 = h_ref[...].astype(jnp.float32)
    h = h_f32.astype(wdt)

    # Fused gate matmuls on the MXU, f32 accumulation.
    gx = jnp.dot(x, wx_ref[...], preferred_element_type=jnp.float32)     # (TB, 3D)
    gh = jnp.dot(h, whrz_ref[...], preferred_element_type=jnp.float32)   # (TB, 2D)

    b = b_ref[...].astype(jnp.float32)   # (3, D): pre-summed [br, bz, bh]

    def _sigmoid(v):
        # sigmoid(v) == 0.5*(1+tanh(0.5*v)): single EUP op instead of exp+div.
        return 0.5 * (1.0 + jnp.tanh(0.5 * v))

    r = _sigmoid(gx[:, 0 * D:1 * D] + gh[:, 0 * D:1 * D] + b[0:1, :])
    z = _sigmoid(gx[:, 1 * D:2 * D] + gh[:, 1 * D:2 * D] + b[1:2, :])

    rh = (r * h_f32).astype(wdt)
    gn = jnp.dot(rh, whh_ref[...], preferred_element_type=jnp.float32)   # (TB, D)
    h_tilde = jnp.tanh(gx[:, 2 * D:3 * D] + gn + b[2:3, :])

    # z*h + (1-z)*h~  ==  h~ + z*(h - h~)
    o_ref[...] = (h_tilde + z * (h_f32 - h_tilde)).astype(o_ref.dtype)


# --------------------------------------------------------------------------
# Host-side parameter packing (done once, not per call)
# --------------------------------------------------------------------------
def pack_gru_params(params, dtype=jnp.bfloat16):
    """params: dict with 'wxr','whr','wxz','whz','wxh','whh' each (D, D) in
    (in, out) layout and 'biases' (6, D) with rows [bxr,bhr,bxz,bhz,bxh,bhh].
    Returns fused + lane-padded parameters for the Pallas kernel."""
    D = params["wxr"].shape[0]
    Dp = _round_up(D, LANE)

    def pad_w(w):
        return jnp.pad(w, ((0, Dp - D), (0, Dp - D))).astype(dtype)

    wx = jnp.concatenate(
        [pad_w(params["wxr"]), pad_w(params["wxz"]), pad_w(params["wxh"])],
        axis=1)                                                # (Dp, 3*Dp)
    wh_rz = jnp.concatenate(
        [pad_w(params["whr"]), pad_w(params["whz"])], axis=1)  # (Dp, 2*Dp)
    whh = pad_w(params["whh"])                                 # (Dp, Dp)

    b = params["biases"].astype(jnp.float32)
    b_sum = jnp.stack([b[0] + b[1], b[2] + b[3], b[4] + b[5]], axis=0)  # (3, D)
    b_sum = jnp.pad(b_sum, ((0, 0), (0, Dp - D)))                       # (3, Dp)

    return {"wx": wx, "wh_rz": wh_rz, "whh": whh, "bias": b_sum,
            "d": D, "dp": Dp}


# --------------------------------------------------------------------------
# Wrapper
# --------------------------------------------------------------------------
def gru_forward(X, H, packed, *, block_b=None):
    B, D = X.shape
    assert H.shape == (B, D), "GRU cell requires input_dim == hidden_dim"
    assert D == packed["d"], "packed params built for a different feature dim"
    Dp = packed["dp"]

    wdt = packed["wx"].dtype
    w_isize = jnp.dtype(wdt).itemsize
    a_isize = jnp.dtype(X.dtype).itemsize

    phys_vmem = _physical_vmem_bytes()
    vmem_cap = int(0.9 * phys_vmem)            # leave headroom below physical
    if block_b is None:
        block_b = 256 if phys_vmem <= (64 << 20) else 512

    # Batch tiling: aim for >= 4 grid programs when the batch allows (dual-TC
    # sharding on v7x + DMA/compute overlap), tile <= block_b rows.
    Bp8 = _round_up(B, SUBLANE)
    max_progs = Bp8 // SUBLANE
    cap_progs = pl.cdiv(Bp8, _round_up(block_b, SUBLANE))
    n_prog = max(1, min(max_progs, max(cap_progs, 4)))
    TB = _round_up(pl.cdiv(Bp8, n_prog), SUBLANE)

    # VMEM accounting: weights are allocated double-buffered even with a
    # constant index_map; add double-buffered x/h/out tiles and the kernel's
    # f32 intermediates, plus slack.
    wbytes = (packed["wx"].size + packed["wh_rz"].size +
              packed["whh"].size) * w_isize
    bbytes = packed["bias"].size * 4

    def _need_bytes(tb):
        act = 3 * 2 * tb * Dp * a_isize        # x, h, out tiles, double-buffered
        tmp = 12 * tb * Dp * 4                 # f32 temporaries in the body
        return 2 * wbytes + 2 * bbytes + act + tmp + (2 << 20)

    while _need_bytes(TB) > vmem_cap and TB > SUBLANE:
        TB = _round_up(max(TB // 2, SUBLANE), SUBLANE)

    # TODO(synk): if 2*wbytes alone exceeds ~80% of VMEM (huge Dp on v7x),
    # stream output-column blocks of the fused weights over a second grid axis.

    grid_b = pl.cdiv(Bp8, TB)
    Bp = grid_b * TB

    # Only zero-pad here; the dtype cast happens inside the kernel.
    Xp = jnp.pad(X, ((0, Bp - B), (0, Dp - D)))
    Hp = jnp.pad(H, ((0, Bp - B), (0, Dp - D)))

    vmem_limit = int(min(max(_need_bytes(TB), 32 << 20), vmem_cap))

    act_spec = pl.BlockSpec((TB, Dp), lambda b: (b, 0))
    wx_spec = pl.BlockSpec((Dp, 3 * Dp), lambda b: (0, 0))      # stays resident
    whrz_spec = pl.BlockSpec((Dp, 2 * Dp), lambda b: (0, 0))    # stays resident
    whh_spec = pl.BlockSpec((Dp, Dp), lambda b: (0, 0))         # stays resident
    bias_spec = pl.BlockSpec((3, Dp), lambda b: (0, 0))

    out_p = pl.pallas_call(
        _gru_kernel,
        out_shape=jax.ShapeDtypeStruct((Bp, Dp), X.dtype),
        grid=(grid_b,),
        in_specs=[act_spec, act_spec, wx_spec, whrz_spec, whh_spec, bias_spec],
        out_specs=act_spec,
        compiler_params=pltpu.CompilerParams(
            dimension_semantics=("parallel",),
            vmem_limit_bytes=vmem_limit),
    )(Xp, Hp, packed["wx"], packed["wh_rz"], packed["whh"], packed["bias"])

    return out_p[:B, :D]


# --------------------------------------------------------------------------
# Pure-JAX reference (unfused, f32) for validation
# --------------------------------------------------------------------------
def _ref_gru(X, H, params):
    def lin(w, b, x):
        return x @ w + b
    b = params["biases"]
    r = jax.nn.sigmoid(lin(params["wxr"], b[0], X) + lin(params["whr"], b[1], H))
    z = jax.nn.sigmoid(lin(params["wxz"], b[2], X) + lin(params["whz"], b[3], H))
    h_ = jnp.tanh(lin(params["wxh"], b[4], X) + lin(params["whh"], b[5], r * H))
    return z * H + (1.0 - z) * h_


if __name__ == "__main__":
    # Small shapes: batch=8, input_dim = hidden_dim = 32 (the module requires
    # them equal).  The wrapper pads to lane-dense (8, 128) tiles internally.
    B, D = 8, 32
    key = jax.random.PRNGKey(0)
    keys = jax.random.split(key, 16)

    bound = 1.0 / float(D) ** 0.5  # PyTorch nn.Linear default init range
    def uni(k, shape):
        return jax.random.uniform(k, shape, jnp.float32, -bound, bound)

    params = {
        # stored transposed relative to PyTorch: (in, out)
        "wxr": uni(keys[0], (D, D)),
        "whr": uni(keys[1], (D, D)),
        "wxz": uni(keys[2], (D, D)),
        "whz": uni(keys[3], (D, D)),
        "wxh": uni(keys[4], (D, D)),
        "whh": uni(keys[5], (D, D)),
        # rows: [bxr, bhr, bxz, bhz, bxh, bhh]
        "biases": jnp.stack([uni(keys[6 + i], (D,)) for i in range(6)], axis=0),
    }

    X = jax.random.normal(keys[12], (B, D), jnp.float32)
    H = jax.random.normal(keys[13], (B, D), jnp.float32)

    ref = _ref_gru(X, H, params)

    # 1) f32-packed path: validates exact forward-pass semantics.
    packed_f32 = pack_gru_params(params, dtype=jnp.float32)
    out_f32 = gru_forward(X, H, packed_f32)
    jax.block_until_ready(out_f32)
    assert out_f32.shape == (B, D)
    assert jnp.allclose(out_f32, ref, atol=1e-5, rtol=1e-5), (
        float(jnp.max(jnp.abs(out_f32 - ref))))

    # 2) bf16-packed path (production default): expected small precision loss.
    packed_bf16 = pack_gru_params(params, dtype=jnp.bfloat16)
    out_bf16 = gru_forward(X, H, packed_bf16)
    jax.block_until_ready(out_bf16)
    assert out_bf16.shape == (B, D)
    assert jnp.allclose(out_bf16, ref, atol=5e-2, rtol=5e-2), (
        float(jnp.max(jnp.abs(out_bf16 - ref))))

    print("KERNEL_OK")
</pallas_src>

<mosaic_0001>
module attributes {stable_mosaic.version = 11 : i64} {
  func.func @_gru_kernel(%arg0: i32, %arg1: memref<8x128xf32, #tpu.memory_space<vmem>>, %arg2: memref<8x128xf32, #tpu.memory_space<vmem>>, %arg3: memref<128x384xf32, #tpu.memory_space<vmem>>, %arg4: memref<128x256xf32, #tpu.memory_space<vmem>>, %arg5: memref<128x128xf32, #tpu.memory_space<vmem>>, %arg6: memref<3x128xf32, #tpu.memory_space<vmem>>, %arg7: memref<8x128xf32, #tpu.memory_space<vmem>>) attributes {dimension_semantics = [#tpu.dimension_semantics<parallel>], iteration_bounds = array<i64: 1>, scalar_prefetch = 0 : i64, scratch_operands = 0 : i64, tpu.core_type = #tpu.core_type<tc>, window_params = [{transform_indices = @transform_0, window_bounds = array<i64: 8, 128>}, {transform_indices = @transform_1, window_bounds = array<i64: 8, 128>}, {pipeline_mode = #tpu.pipeline_mode<synchronous>, transform_indices = @transform_2, window_bounds = array<i64: 128, 384>}, {pipeline_mode = #tpu.pipeline_mode<synchronous>, transform_indices = @transform_3, window_bounds = array<i64: 128, 256>}, {pipeline_mode = #tpu.pipeline_mode<synchronous>, transform_indices = @transform_4, window_bounds = array<i64: 128, 128>}, {pipeline_mode = #tpu.pipeline_mode<synchronous>, transform_indices = @transform_5, window_bounds = array<i64: 3, 128>}, {transform_indices = @transform_6, window_bounds = array<i64: 8, 128>}]} {
    %c0 = arith.constant 0 : index
    %c0_0 = arith.constant 0 : index
    %0 = vector.load %arg1[%c0, %c0_0] : memref<8x128xf32, #tpu.memory_space<vmem>>, vector<8x128xf32>
    %c0_1 = arith.constant 0 : index
    %c0_2 = arith.constant 0 : index
    %1 = vector.load %arg2[%c0_1, %c0_2] : memref<8x128xf32, #tpu.memory_space<vmem>>, vector<8x128xf32>
    %c0_3 = arith.constant 0 : index
    %c0_4 = arith.constant 0 : index
    %2 = vector.load %arg3[%c0_3, %c0_4] : memref<128x384xf32, #tpu.memory_space<vmem>>, vector<128x384xf32>
    %cst = arith.constant dense<0.000000e+00> : vector<8x384xf32>
    %3 = tpu.matmul %0, %2, %cst {dimension_numbers = #tpu.dot_dimension_numbers<[1], [0], [0], [1], [0, 0, 1, 1], [], []>} : vector<8x128xf32>, vector<128x384xf32>, vector<8x384xf32> -> vector<8x384xf32>
    %c0_5 = arith.constant 0 : index
    %c0_6 = arith.constant 0 : index
    %4 = vector.load %arg4[%c0_5, %c0_6] : memref<128x256xf32, #tpu.memory_space<vmem>>, vector<128x256xf32>
    %cst_7 = arith.constant dense<0.000000e+00> : vector<8x256xf32>
    %5 = tpu.matmul %1, %4, %cst_7 {dimension_numbers = #tpu.dot_dimension_numbers<[1], [0], [0], [1], [0, 0, 1, 1], [], []>} : vector<8x128xf32>, vector<128x256xf32>, vector<8x256xf32> -> vector<8x256xf32>
    %c0_8 = arith.constant 0 : index
    %c0_9 = arith.constant 0 : index
    %6 = vector.load %arg6[%c0_8, %c0_9] : memref<3x128xf32, #tpu.memory_space<vmem>>, vector<3x128xf32>
    %7 = vector.extract_strided_slice %3 {offsets = [0, 0], sizes = [8, 128], strides = [1, 1]} : vector<8x384xf32> to vector<8x128xf32>
    %8 = vector.extract_strided_slice %5 {offsets = [0, 0], sizes = [8, 128], strides = [1, 1]} : vector<8x256xf32> to vector<8x128xf32>
    %9 = arith.addf %7, %8 : vector<8x128xf32>
    %10 = vector.extract_strided_slice %6 {offsets = [0, 0], sizes = [1, 128], strides = [1, 1]} : vector<3x128xf32> to vector<1x128xf32>
    %11 = vector.broadcast %10 : vector<1x128xf32> to vector<8x128xf32>
    %12 = arith.addf %9, %11 : vector<8x128xf32>
    %cst_10 = arith.constant 5.000000e-01 : f32
    %13 = vector.broadcast %cst_10 : f32 to vector<8x128xf32>
    %14 = arith.mulf %13, %12 : vector<8x128xf32>
    %15 = math.tanh %14 : vector<8x128xf32>
    %cst_11 = arith.constant 1.000000e+00 : f32
    %16 = vector.broadcast %cst_11 : f32 to vector<8x128xf32>
    %17 = arith.addf %16, %15 : vector<8x128xf32>
    %cst_12 = arith.constant 5.000000e-01 : f32
    %18 = vector.broadcast %cst_12 : f32 to vector<8x128xf32>
    %19 = arith.mulf %18, %17 : vector<8x128xf32>
    %20 = vector.extract_strided_slice %3 {offsets = [0, 128], sizes = [8, 128], strides = [1, 1]} : vector<8x384xf32> to vector<8x128xf32>
    %21 = vector.extract_strided_slice %5 {offsets = [0, 128], sizes = [8, 128], strides = [1, 1]} : vector<8x256xf32> to vector<8x128xf32>
    %22 = arith.addf %20, %21 : vector<8x128xf32>
    %23 = vector.extract_strided_slice %6 {offsets = [1, 0], sizes = [1, 128], strides = [1, 1]} : vector<3x128xf32> to vector<1x128xf32>
    %24 = vector.broadcast %23 : vector<1x128xf32> to vector<8x128xf32>
    %25 = arith.addf %22, %24 : vector<8x128xf32>
    %cst_13 = arith.constant 5.000000e-01 : f32
    %26 = vector.broadcast %cst_13 : f32 to vector<8x128xf32>
    %27 = arith.mulf %26, %25 : vector<8x128xf32>
    %28 = math.tanh %27 : vector<8x128xf32>
    %cst_14 = arith.constant 1.000000e+00 : f32
    %29 = vector.broadcast %cst_14 : f32 to vector<8x128xf32>
    %30 = arith.addf %29, %28 : vector<8x128xf32>
    %cst_15 = arith.constant 5.000000e-01 : f32
    %31 = vector.broadcast %cst_15 : f32 to vector<8x128xf32>
    %32 = arith.mulf %31, %30 : vector<8x128xf32>
    %33 = arith.mulf %19, %1 : vector<8x128xf32>
    %c0_16 = arith.constant 0 : index
    %c0_17 = arith.constant 0 : index
    %34 = vector.load %arg5[%c0_16, %c0_17] : memref<128x128xf32, #tpu.memory_space<vmem>>, vector<128x128xf32>
    %cst_18 = arith.constant dense<0.000000e+00> : vector<8x128xf32>
    %35 = tpu.matmul %33, %34, %cst_18 {dimension_numbers = #tpu.dot_dimension_numbers<[1], [0], [0], [1], [0, 0, 1, 1], [], []>} : vector<8x128xf32>, vector<128x128xf32>, vector<8x128xf32> -> vector<8x128xf32>
    %36 = vector.extract_strided_slice %3 {offsets = [0, 256], sizes = [8, 128], strides = [1, 1]} : vector<8x384xf32> to vector<8x128xf32>
    %37 = arith.addf %36, %35 : vector<8x128xf32>
    %38 = vector.extract_strided_slice %6 {offsets = [2, 0], sizes = [1, 128], strides = [1, 1]} : vector<3x128xf32> to vector<1x128xf32>
    %39 = vector.broadcast %38 : vector<1x128xf32> to vector<8x128xf32>
    %40 = arith.addf %37, %39 : vector<8x128xf32>
    %41 = math.tanh %40 : vector<8x128xf32>
    %42 = arith.subf %1, %41 : vector<8x128xf32>
    %43 = arith.mulf %32, %42 : vector<8x128xf32>
    %44 = arith.addf %41, %43 : vector<8x128xf32>
    %c0_19 = arith.constant 0 : index
    %c0_20 = arith.constant 0 : index
    %45 = vector.load %arg7[%c0_19, %c0_20] : memref<8x128xf32, #tpu.memory_space<vmem>>, vector<8x128xf32>
    tpu.vector_store %arg7[%c0_19, %c0_20], %44 {strides = array<i32>} : memref<8x128xf32, #tpu.memory_space<vmem>>, vector<8x128xf32>,
    return
  }
  func.func @transform_0(%arg0: i32) -> (i32, i32) {
    %c0_i32 = arith.constant 0 : i32
    %c0_i32_0 = arith.constant 0 : i32
    return %arg0, %c0_i32 : i32, i32
  }
  func.func @transform_1(%arg0: i32) -> (i32, i32) {
    %c0_i32 = arith.constant 0 : i32
    %c0_i32_0 = arith.constant 0 : i32
    return %arg0, %c0_i32 : i32, i32
  }
  func.func @transform_2(%arg0: i32) -> (i32, i32) {
    %c0_i32 = arith.constant 0 : i32
    %c0_i32_0 = arith.constant 0 : i32
    %c0_i32_1 = arith.constant 0 : i32
    return %c0_i32, %c0_i32_0 : i32, i32
  }
  func.func @transform_3(%arg0: i32) -> (i32, i32) {
    %c0_i32 = arith.constant 0 : i32
    %c0_i32_0 = arith.constant 0 : i32
    %c0_i32_1 = arith.constant 0 : i32
    return %c0_i32, %c0_i32_0 : i32, i32
  }
  func.func @transform_4(%arg0: i32) -> (i32, i32) {
    %c0_i32 = arith.constant 0 : i32
    %c0_i32_0 = arith.constant 0 : i32
    %c0_i32_1 = arith.constant 0 : i32
    return %c0_i32, %c0_i32_0 : i32, i32
  }
  func.func @transform_5(%arg0: i32) -> (i32, i32) {
    %c0_i32 = arith.constant 0 : i32
    %c0_i32_0 = arith.constant 0 : i32
    %c0_i32_1 = arith.constant 0 : i32
    return %c0_i32, %c0_i32_0 : i32, i32
  }
  func.func @transform_6(%arg0: i32) -> (i32, i32) {
    %c0_i32 = arith.constant 0 : i32
    %c0_i32_0 = arith.constant 0 : i32
    return %arg0, %c0_i32 : i32, i32
  }
}

</mosaic_0001>

<bundles_post_ra>
// kernel: tpu_custom_call.1
= control target key start
LH: loop header
LB: loop body
LE: loop exit
PB: predicated region body
PF: predicated region fallthrough
CT: control target
= control target key end

     0   :  { %11 = vsyncpa [#allocation3], 0  ;;  %s1067_s0 = inlined_call_operand.hbm [shape: f32[8,128], index: 0, kind: input, shape index: {}]   ;;  %s1068_s1 = inlined_call_operand.hbm [shape: f32[8,128], index: 1, kind: input, shape index: {}]   ;;  %s1069_s2 = inlined_call_operand.hbm [shape: f32[128,384], index: 2, kind: input, shape index: {}]   ;;  %s1070_s3 = inlined_call_operand.hbm [shape: f32[128,256], index: 3, kind: input, shape index: {}]   ;;  %s1071_s4 = inlined_call_operand.hbm [shape: f32[128,128], index: 4, kind: input, shape index: {}]   ;;  %s1072_s5 = inlined_call_operand.vmem [shape: f32[3,128], index: 5, kind: input, shape index: {}]   ;;  %s1073_s6 = inlined_call_operand.hbm [shape: f32[8,128], index: 6, kind: output, shape index: {}]  }
   0x1   :  { %12 = vsyncpa [#allocation6], 0 }
   0x2   :  { %13 = vsyncpa [#allocation9], 0 }
   0x3   :  { %14 = vsyncpa [#allocation4], 0  ;;  %s897_s21 = smov [#allocation5]   ;;  %s898_s23 = smov [#allocation8]  }
   0x4   :  { %s31_s22 = sshll.u32 %s897_s21, 4  ;;  %s52_s24 = sshll.u32 %s898_s23, 4  ;;  %s32_s22 = int_to_ptr.vmem [resolvable:$true] %s31_s22  ;;  %s947_s24 = int_to_ptr.vmem [resolvable:$true] %s52_s24 }
   0x5   :  { %s757_s27 = scalar_lea.hbm %s1068_s1, 128 }
   0x6   :  { %p758_p0 = scmp.ne.s32.totalorder %s1068_s1, %s757_s27  ;;  %p761_p1 = scmp.lt.u32.totalorder %s757_s27, %s1068_s1 }
   0x8   :  { %p763_p2 = pnand %p761_p1, %p758_p0 }
   0xa   :  { %766 = shalt.err (!%p763_p2)
}
   0xb   :  { %s767_s8 = scalar_lea.vmem %s32_s22, 128  ;;  %p772_p4 = scmp.lt.s32.totalorder %s32_s22, %s32_s22 }
   0xc   :  { %p768_p3 = scmp.ne.s32.totalorder %s32_s22, %s767_s8  ;;  %p773_p5 = scmp.lt.s32.totalorder %s767_s8, %s767_s8 }
   0xe   :  { %p774_p6 = por %p773_p5, %p772_p4 }
  0x10   :  { %p775_p7 = pnand %p774_p6, %p768_p3 }
  0x12   :  { %778 = shalt.err (!%p775_p7)
}
  0x13   :  { %34 = dma.hbm_to_vmem [thread:$0]  %s1068_s1, 128, %s32_s22, [#allocation6]  }
  0x14   :  { %s779_s13 = scalar_lea.hbm %s1070_s3, 4096 }
  0x15   :  { %p780_p8 = scmp.ne.s32.totalorder %s1070_s3, %s779_s13  ;;  %p783_p9 = scmp.lt.u32.totalorder %s779_s13, %s1070_s3 }
  0x17   :  { %p785_p10 = pnand %p783_p9, %p780_p8 }
  0x19   :  { %788 = shalt.err (!%p785_p10)
}
  0x1a   :  { %s789_s18 = scalar_lea.vmem %s947_s24, 4096  ;;  %p794_p12 = scmp.lt.s32.totalorder %s947_s24, %s947_s24 }
  0x1b   :  { %p790_p11 = scmp.ne.s32.totalorder %s947_s24, %s789_s18  ;;  %p795_p13 = scmp.lt.s32.totalorder %s789_s18, %s789_s18 }
  0x1d   :  { %p796_p0 = por %p795_p13, %p794_p12 }
  0x1f   :  { %p797_p1 = pnand %p796_p0, %p790_p11 }
  0x21   :  { %800 = shalt.err (!%p797_p1)
}
  0x22   :  { %s899_s1 = smov 256   ;;  %s900_s19 = smov 16  }
  0x23   :  { %58 = dma.hbm_to_vmem [thread:$0]  %s1070_s3, 4096, %s947_s24, [#allocation9], %s899_s1, %s899_s1, %s900_s19  }
  0x24   :  { %s901_s22 = smov [#allocation2]   ;;  %s902_s25 = smov [#allocation7]  }
  0x25   :  { %s21_s23 = sshll.u32 %s901_s22, 4  ;;  %s40_s26 = sshll.u32 %s902_s25, 4  ;;  %s22_s23 = int_to_ptr.vmem [resolvable:$true] %s21_s23  ;;  %s978_s26 = int_to_ptr.vmem [resolvable:$true] %s40_s26 }
  0x26   :  { %s801_s29 = scalar_lea.hbm %s1067_s0, 128 }
  0x27   :  { %p802_p2 = scmp.ne.s32.totalorder %s1067_s0, %s801_s29  ;;  %p805_p3 = scmp.lt.u32.totalorder %s801_s29, %s1067_s0 }
  0x29   :  { %p807_p4 = pnand %p805_p3, %p802_p2 }
  0x2b   :  { %810 = shalt.err (!%p807_p4)
}
  0x2c   :  { %s811_s3 = scalar_lea.vmem %s22_s23, 128  ;;  %p816_p6 = scmp.lt.s32.totalorder %s22_s23, %s22_s23 }
  0x2d   :  { %p812_p5 = scmp.ne.s32.totalorder %s22_s23, %s811_s3  ;;  %p817_p7 = scmp.lt.s32.totalorder %s811_s3, %s811_s3 }
  0x2f   :  { %p818_p8 = por %p817_p7, %p816_p6 }
  0x31   :  { %p819_p9 = pnand %p818_p8, %p812_p5 }
  0x33   :  { %822 = shalt.err (!%p819_p9)
}
  0x34   :  { %24 = dma.hbm_to_vmem [thread:$0]  %s1067_s0, 128, %s22_s23, [#allocation3]  }
  0x35   :  { %s823_s13 = scalar_lea.hbm %s1069_s2, 6144 }
  0x36   :  { %p824_p10 = scmp.ne.s32.totalorder %s1069_s2, %s823_s13  ;;  %p827_p11 = scmp.lt.u32.totalorder %s823_s13, %s1069_s2 }
  0x38   :  { %p829_p12 = pnand %p827_p11, %p824_p10 }
  0x3a   :  { %832 = shalt.err (!%p829_p12)
}
  0x3b   :  { %s833_s18 = scalar_lea.vmem %s978_s26, 6144  ;;  %p838_p0 = scmp.lt.s32.totalorder %s978_s26, %s978_s26 }
  0x3c   :  { %p834_p13 = scmp.ne.s32.totalorder %s978_s26, %s833_s18  ;;  %p839_p1 = scmp.lt.s32.totalorder %s833_s18, %s833_s18 }
  0x3e   :  { %p840_p2 = por %p839_p1, %p838_p0 }
  0x40   :  { %p841_p3 = pnand %p840_p2, %p834_p13 }
  0x42   :  { %844 = shalt.err (!%p841_p3)
}
  0x43   :  { %s903_s0 = smov 384   ;;  %s904_s1 = smov 24  }
  0x44   :  { %46 = dma.hbm_to_vmem [thread:$0]  %s1069_s2, 6144, %s978_s26, [#allocation6], %s903_s0, %s903_s0, %s904_s1  }
  0x45   :  { %s905_s21 = smov [#allocation10]   ;;  %s845_s27 = scalar_lea.hbm %s1071_s4, 2048 }
  0x46   :  { %s64_s22 = sshll.u32 %s905_s21, 4  ;;  %p846_p4 = scmp.ne.s32.totalorder %s1071_s4, %s845_s27  ;;  %s65_s22 = int_to_ptr.vmem [resolvable:$true] %s64_s22 }
  0x47   :  { %p849_p5 = scmp.lt.u32.totalorder %s845_s27, %s1071_s4 }
  0x49   :  { %p851_p6 = pnand %p849_p5, %p846_p4 }
  0x4b   :  { %854 = shalt.err (!%p851_p6)
}
  0x4c   :  { %s855_s8 = scalar_lea.vmem %s65_s22, 2048  ;;  %p860_p8 = scmp.lt.s32.totalorder %s65_s22, %s65_s22 }
  0x4d   :  { %p856_p7 = scmp.ne.s32.totalorder %s65_s22, %s855_s8  ;;  %p861_p9 = scmp.lt.s32.totalorder %s855_s8, %s855_s8 }
  0x4f   :  { %p862_p10 = por %p861_p9, %p860_p8 }
  0x51   :  { %p863_p11 = pnand %p862_p10, %p856_p7 }
  0x53   :  { %866 = shalt.err (!%p863_p11)
}
  0x54   :  { %s906_s2 = smov 128   ;;  %s907_s26 = smov 8  }
  0x55   :  { %70 = dma.hbm_to_vmem [thread:$0]  %s1071_s4, 2048, %s65_s22, [#allocation9], %s906_s2, %s906_s2, %s907_s26  }
  0x56   :  { %889 = dma.done.wait [#allocation3], 128  }
  0x57   :  { %890 = vsyncadd [#allocation3], 4294967168 }
  0x58   :  { %891 = dma.done.wait [#allocation6], 6272  }
  0x59   :  { %892 = vsyncadd [#allocation6], 4294961024 }
  0x5a   :  { %893 = dma.done.wait [#allocation9], 6144  }
  0x5b   :  { %894 = vsyncadd [#allocation9], 4294961152  ;;  %v908_v0 = vmov 0.0   ;;  %v909_v1 = vmov 0.0|0.0   ;;  %vm910_vm0 = vmmov 0   ;;  %v91_v2 = vld [vmem:[#allocation7 + $0x8] sm:$0xff] }
  0x5c   :  { %202 = vmatprep.mubr.f32.mxu0 %v908_v0  ;;  %654 = vmatprep.subr.bf16.mxu1 %v909_v1  ;;  %v94_v3 = vld [vmem:[#allocation7 + $0x20] sm:$0xff]  ;;  %v93_v6 = vld [vmem:[#allocation7 + $0x18] sm:$0xff]  ;;  %v100_v8 = vld [vmem:[#allocation7 + $0x50] sm:$0xff] }
  0x5d   :  { %584 = vmatprep.mubr.msk.f32.mxu1 %vm910_vm0, %v908_v0  ;;  %v90_v4 = vld [vmem:[#allocation7] sm:$0xff]  ;;  %v622_v5 = vpack.c.bf16 %v94_v3, %v91_v2  ;;  %v97_v7 = vld [vmem:[#allocation7 + $0x38] sm:$0xff]  ;;  %v96_v11 = vld [vmem:[#allocation7 + $0x30] sm:$0xff] }
  0x5e   :  { %v624_v9 = vpack.c.bf16 %v93_v6, %v90_v4  ;;  %v626_v10 = vpack.c.bf16 %v100_v8, %v97_v7  ;;  %v99_v12 = vld [vmem:[#allocation7 + $0x48] sm:$0xff]  ;;  %v106_v14 = vld [vmem:[#allocation7 + $0x80] sm:$0xff]  ;;  %v105_v18 = vld [vmem:[#allocation7 + $0x78] sm:$0xff] }
  0x5f   :  { %v103_v13 = vld [vmem:[#allocation7 + $0x68] sm:$0xff]  ;;  %623 = vmatprep.subr.bf16.mxu0 %v622_v5  ;;  %v628_v15 = vpack.c.bf16 %v99_v12, %v96_v11  ;;  %v102_v17 = vld [vmem:[#allocation7 + $0x60] sm:$0xff]  ;;  %v109_v19 = vld [vmem:[#allocation7 + $0x98] sm:$0xff] }
  0x60   :  { %625 = vmatpush1.bf16.msra.mxu0 %v624_v9  ;;  %v630_v16 = vpack.c.bf16 %v106_v14, %v103_v13  ;;  %v112_v20 = vld [vmem:[#allocation7 + $0xb0] sm:$0xff]  ;;  %v632_v21 = vpack.c.bf16 %v105_v18, %v102_v17  ;;  %v111_v24 = vld [vmem:[#allocation7 + $0xa8] sm:$0xff]  ;;  %v118_v26 = vld [vmem:[#allocation7 + $0xe0] sm:$0xff] }
  0x61   :  { %627 = vmatprep.subr.bf16.mxu0 %v626_v10  ;;  %v634_v22 = vpack.c.bf16 %v112_v20, %v109_v19  ;;  %v108_v23 = vld [vmem:[#allocation7 + $0x90] sm:$0xff]  ;;  %v115_v25 = vld [vmem:[#allocation7 + $0xc8] sm:$0xff]  ;;  %v114_v29 = vld [vmem:[#allocation7 + $0xc0] sm:$0xff] }
  0x62   :  { %v636_v27 = vpack.c.bf16 %v111_v24, %v108_v23  ;;  %v638_v28 = vpack.c.bf16 %v118_v26, %v115_v25  ;;  %v117_v30 = vld [vmem:[#allocation7 + $0xd8] sm:$0xff]  ;;  %v124_v32 = vld [vmem:[#allocation7 + $0x110] sm:$0xff]  ;;  %v123_v36 = vld [vmem:[#allocation7 + $0x108] sm:$0xff] }
  0x63   :  { %v121_v31 = vld [vmem:[#allocation7 + $0xf8] sm:$0xff]  ;;  %v640_v33 = vpack.c.bf16 %v117_v30, %v114_v29  ;;  %v120_v35 = vld [vmem:[#allocation7 + $0xf0] sm:$0xff]  ;;  %v127_v37 = vld [vmem:[#allocation7 + $0x128] sm:$0xff] }
  0x64   :  { %629 = vmatpush1.bf16.msra.mxu0 %v628_v15  ;;  %v642_v34 = vpack.c.bf16 %v124_v32, %v121_v31  ;;  %v130_v38 = vld [vmem:[#allocation7 + $0x140] sm:$0xff]  ;;  %v644_v39 = vpack.c.bf16 %v123_v36, %v120_v35  ;;  %v129_v42 = vld [vmem:[#allocation7 + $0x138] sm:$0xff]  ;;  %v136_v44 = vld [vmem:[#allocation7 + $0x170] sm:$0xff] }
  0x65   :  { %631 = vmatprep.subr.bf16.mxu0 %v630_v16  ;;  %v126_v40 = vld [vmem:[#allocation7 + $0x120] sm:$0xff]  ;;  %v646_v41 = vpack.c.bf16 %v130_v38, %v127_v37  ;;  %v133_v43 = vld [vmem:[#allocation7 + $0x158] sm:$0xff]  ;;  %v92_v45 = vld [vmem:[#allocation7 + $0x10] sm:$0xff] }
  0x66   :  { %v95_v46 = vld [vmem:[#allocation7 + $0x28] sm:$0xff]  ;;  %v98_v47 = vld [vmem:[#allocation7 + $0x40] sm:$0xff]  ;;  %v101_v49 = vld [vmem:[#allocation7 + $0x58] sm:$0xff]  ;;  %v648_v50 = vpack.c.bf16 %v129_v42, %v126_v40  ;;  %v650_v51 = vpack.c.bf16 %v136_v44, %v133_v43 }
  0x67   :  { %v655_v48 = vpack.c.bf16 %v95_v46, %v92_v45  ;;  %v132_v52 = vld [vmem:[#allocation7 + $0x150] sm:$0xff]  ;;  %v135_v53 = vld [vmem:[#allocation7 + $0x168] sm:$0xff]  ;;  %v658_v55 = vpack.c.bf16 %v101_v49, %v98_v47  ;;  %v282_v56 = vld [vmem:[#allocation8 + $0x18] sm:$0xff] }
  0x68   :  { %633 = vmatpush1.bf16.msra.mxu0 %v632_v21  ;;  %v280_v54 = vld [vmem:[#allocation8 + $0x8] sm:$0xff]  ;;  %v104_v57 = vld [vmem:[#allocation7 + $0x70] sm:$0xff]  ;;  %v652_v59 = vpack.c.bf16 %v135_v53, %v132_v52  ;;  %v279_v61 = vld [vmem:[#allocation8] sm:$0xff] }
  0x69   :  { %635 = vmatprep.subr.bf16.mxu0 %v634_v22  ;;  %656 = vmatpush3.bf16.msra.mxu1 %v655_v48  ;;  %v107_v58 = vld [vmem:[#allocation7 + $0x88] sm:$0xff]  ;;  %v678_v60 = vpack.c.bf16 %v282_v56, %v280_v54  ;;  %v281_v62 = vld [vmem:[#allocation8 + $0x10] sm:$0xff]  ;;  %v286_v3 = vld [vmem:[#allocation8 + $0x38] sm:$0xff] }
  0x6a   :  { %657 = vmatprep.subr.bf16.mxu1 %v909_v1  ;;  %v284_v63 = vld [vmem:[#allocation8 + $0x28] sm:$0xff]  ;;  %v661_v2 = vpack.c.bf16 %v107_v58, %v104_v57  ;;  %v110_v4 = vld [vmem:[#allocation7 + $0xa0] sm:$0xff]  ;;  %v113_v5 = vld [vmem:[#allocation7 + $0xb8] sm:$0xff]  ;;  %v680_v7 = vpack.c.bf16 %v281_v62, %v279_v61 }
  0x6b   :  { %v1027_v6 = vld [vmem:[#allocation2] sm:$0xff]  ;;  %v682_v8 = vpack.c.bf16 %v286_v3, %v284_v63  ;;  %v283_v9 = vld [vmem:[#allocation8 + $0x20] sm:$0xff]  ;;  %v288_v11 = vld [vmem:[#allocation8 + $0x48] sm:$0xff]  ;;  %v664_v12 = vpack.c.bf16 %v113_v5, %v110_v4 }
  0x6c   :  { %637 = vmatpush1.bf16.msra.mxu0 %v636_v27  ;;  %v285_v10 = vld [vmem:[#allocation8 + $0x30] sm:$0xff]  ;;  %v290_v13 = vld [vmem:[#allocation8 + $0x58] sm:$0xff]  ;;  %v119_v15 = vld [vmem:[#allocation7 + $0xe8] sm:$0xff] }
  0x6d   :  { %639 = vmatprep.subr.bf16.mxu0 %v638_v28  ;;  %659 = vmatpush3.bf16.msra.mxu1 %v658_v55  ;;  %v116_v14 = vld [vmem:[#allocation7 + $0xd0] sm:$0xff]  ;;  %v684_v16 = vpack.c.bf16 %v285_v10, %v283_v9  ;;  %v686_v17 = vpack.c.bf16 %v290_v13, %v288_v11  ;;  %v287_v18 = vld [vmem:[#allocation8 + $0x40] sm:$0xff]  ;;  %v292_v20 = vld [vmem:[#allocation8 + $0x68] sm:$0xff] }
  0x6e   :  { %660 = vmatprep.subr.bf16.mxu1 %v909_v1  ;;  %v289_v19 = vld [vmem:[#allocation8 + $0x50] sm:$0xff]  ;;  %v667_v21 = vpack.c.bf16 %v119_v15, %v116_v14  ;;  %v294_v22 = vld [vmem:[#allocation8 + $0x78] sm:$0xff]  ;;  %v122_v23 = vld [vmem:[#allocation7 + $0x100] sm:$0xff] }
  0x6f   :  { %v125_v24 = vld [vmem:[#allocation7 + $0x118] sm:$0xff]  ;;  %v688_v25 = vpack.c.bf16 %v289_v19, %v287_v18  ;;  %v690_v26 = vpack.c.bf16 %v294_v22, %v292_v20  ;;  %v291_v27 = vld [vmem:[#allocation8 + $0x60] sm:$0xff]  ;;  %v293_v28 = vld [vmem:[#allocation8 + $0x70] sm:$0xff] }
  0x70   :  { %641 = vmatpush1.bf16.msra.mxu0 %v640_v33  ;;  %v296_v29 = vld [vmem:[#allocation8 + $0x88] sm:$0xff]  ;;  %v670_v30 = vpack.c.bf16 %v125_v24, %v122_v23  ;;  %v298_v31 = vld [vmem:[#allocation8 + $0x98] sm:$0xff]  ;;  %v128_v32 = vld [vmem:[#allocation7 + $0x130] sm:$0xff]  ;;  %v384_v23 = vlaneseq }
  0x71   :  { %643 = vmatprep.subr.bf16.mxu0 %v642_v34  ;;  %662 = vmatpush3.bf16.msra.mxu1 %v661_v2  ;;  %v131_v33 = vld [vmem:[#allocation7 + $0x148] sm:$0xff]  ;;  %v692_v34 = vpack.c.bf16 %v293_v28, %v291_v27  ;;  %v694_v35 = vpack.c.bf16 %v298_v31, %v296_v29  ;;  %v295_v36 = vld [vmem:[#allocation8 + $0x80] sm:$0xff]  ;;  %v297_v37 = vld [vmem:[#allocation8 + $0x90] sm:$0xff] }
  0x72   :  { %663 = vmatprep.subr.bf16.mxu1 %v909_v1  ;;  %v300_v38 = vld [vmem:[#allocation8 + $0xa8] sm:$0xff]  ;;  %v302_v40 = vld [vmem:[#allocation8 + $0xb8] sm:$0xff]  ;;  %v696_v43 = vpack.c.bf16 %v297_v37, %v295_v36  ;;  %v299_v45 = vld [vmem:[#allocation8 + $0xa0] sm:$0xff]  ;;  %v385_v24 = vshrl.u32 %v384_v23, 7 }
  0x73   :  { %v137_v42 = vld [vmem:[#allocation7 + $0x178] sm:$0xff]  ;;  %v698_v44 = vpack.c.bf16 %v302_v40, %v300_v38  ;;  %v301_v46 = vld [vmem:[#allocation8 + $0xb0] sm:$0xff]  ;;  %v304_v47 = vld [vmem:[#allocation8 + $0xc8] sm:$0xff] }
  0x74   :  { %645 = vmatpush1.bf16.msra.mxu0 %v644_v39  ;;  %v673_v39 = vpack.c.bf16 %v131_v33, %v128_v32  ;;  %v306_v49 = vld [vmem:[#allocation8 + $0xd8] sm:$0xff]  ;;  %v700_v52 = vpack.c.bf16 %v301_v46, %v299_v45  ;;  %v303_v54 = vld [vmem:[#allocation8 + $0xc0] sm:$0xff]  ;;  %v305_v55 = vld [vmem:[#allocation8 + $0xd0] sm:$0xff]  ;;  %v386_v27 = vsub.s32 0, %v385_v24  ;;  %v396_v37 = vsub.s32 1, %v385_v24 }
  0x75   :  { %647 = vmatprep.subr.bf16.mxu0 %v646_v41  ;;  %665 = vmatpush3.bf16.msra.mxu1 %v664_v12  ;;  %v134_v41 = vld [vmem:[#allocation7 + $0x160] sm:$0xff]  ;;  %v702_v53 = vpack.c.bf16 %v306_v49, %v304_v47  ;;  %v308_v56 = vld [vmem:[#allocation8 + $0xe8] sm:$0xff]  ;;  %v310_v58 = vld [vmem:[#allocation8 + $0xf8] sm:$0xff]  ;;  %v704_v61 = vpack.c.bf16 %v305_v55, %v303_v54 }
  0x76   :  { %666 = vmatprep.subr.bf16.mxu1 %v909_v1  ;;  %v676_v48 = vpack.c.bf16 %v137_v42, %v134_v41  ;;  %v706_v62 = vpack.c.bf16 %v310_v58, %v308_v56  ;;  %v307_v63 = vld [vmem:[#allocation8 + $0xe0] sm:$0xff]  ;;  %v309_v2 = vld [vmem:[#allocation8 + $0xf0] sm:$0xff]  ;;  %v409_v5 = vld [vmem:[#allocation10 + $0x28] sm:$0xff]  ;;  %v493_v41 = vsub.s32 2, %v385_v24 }
  0x77   :  { %v408_v4 = vld [vmem:[#allocation10 + $0x20] sm:$0xff]  ;;  %v410_v9 = vld [vmem:[#allocation10 + $0x30] sm:$0xff]  ;;  %v411_v10 = vld [vmem:[#allocation10 + $0x38] sm:$0xff] }
  0x78   :  { %649 = vmatpush1.bf16.msra.mxu0 %v648_v50  ;;  %v404_v50 = vld [vmem:[#allocation10] sm:$0xff]  ;;  %v720_v11 = vpack.c.bf16 %v411_v10, %v410_v9  ;;  %v413_v12 = vld [vmem:[#allocation10 + $0x48] sm:$0xff]  ;;  %v414_v14 = vld [vmem:[#allocation10 + $0x50] sm:$0xff] }
  0x79   :  { %651 = vmatprep.subr.bf16.mxu0 %v650_v51  ;;  %668 = vmatpush3.bf16.msra.mxu1 %v667_v21  ;;  %v405_v51 = vld [vmem:[#allocation10 + $0x8] sm:$0xff]  ;;  %v415_v15 = vld [vmem:[#allocation10 + $0x58] sm:$0xff]  ;;  %v418_v20 = vld [vmem:[#allocation10 + $0x70] sm:$0xff] }
  0x7a   :  { %669 = vmatprep.subr.bf16.mxu1 %v909_v1  ;;  %v711_v57 = vpack.c.bf16 %v405_v51, %v404_v50  ;;  %v417_v18 = vld [vmem:[#allocation10 + $0x68] sm:$0xff]  ;;  %v419_v21 = vld [vmem:[#allocation10 + $0x78] sm:$0xff]  ;;  %v382_v28 = vld [vmem:[%s1072_s5] sm:$0x7]  ;;  %s911_s5 = smov [#allocation11]  }
  0x7b   :  { %v732_v22 = vpack.c.bf16 %v419_v21, %v418_v20  ;;  %v387_v29 = vrot.slane %v382_v28, %v386_v27  ;;  %v397_v38 = vrot.slane %v382_v28, %v396_v37  ;;  %v494_v42 = vrot.slane %v382_v28, %v493_v41  ;;  %s507_s10 = sshll.u32 %s911_s5, 4  ;;  %s508_s10 = int_to_ptr.vmem [resolvable:$true] %s507_s10 }
  0x7c   :  { %653 = vmatpush1.bf16.msra.mxu0 %v652_v59  ;;  %v406_v59 = vld [vmem:[#allocation10 + $0x10] sm:$0xff]  ;;  %s867_s11 = scalar_lea.vmem %s508_s10, 128  ;;  %p872_p13 = scmp.lt.s32.totalorder %s508_s10, %s508_s10 }
  0x7d   :  { %679 = vmatprep.subr.bf16.mxu0 %v678_v60  ;;  %671 = vmatpush3.bf16.msra.mxu1 %v670_v30  ;;  %v407_v60 = vld [vmem:[#allocation10 + $0x18] sm:$0xff]  ;;  %p868_p12 = scmp.ne.s32.totalorder %s508_s10, %s867_s11  ;;  %p873_p0 = scmp.lt.s32.totalorder %s867_s11, %s867_s11 }
  0x7e   :  { %672 = vmatprep.subr.bf16.mxu1 %v909_v1  ;;  %v714_v3 = vpack.c.bf16 %v407_v60, %v406_v59 }
  0x7f   :  { %203 = vmatmul.mubr.f32.vlgmr.msra.gmra.mrb[0].mxu0 %v1027_v6  ;;  %p874_p1 = por %p873_p0, %p872_p13 }
  0x80   :  { %681 = vmatpush1.bf16.msra.mxu0 %v680_v7  ;;  %375 = vmatprep.mubr.f32.mxu0 %v908_v0  ;;  %v708_v7 = vpack.c.bf16 %v309_v2, %v307_v63 }
  0x81   :  { %683 = vmatprep.subr.bf16.mxu0 %v682_v8  ;;  %674 = vmatpush3.bf16.msra.mxu1 %v673_v39  ;;  %v717_v8 = vpack.c.bf16 %v409_v5, %v408_v4  ;;  %p875_p2 = pnand %p874_p1, %p868_p12 }
  0x82   :  { %675 = vmatprep.subr.bf16.mxu1 %v909_v1 }
  0x84   :  { %685 = vmatpush1.bf16.msra.mxu0 %v684_v16  ;;  %v726_v16 = vpack.c.bf16 %v415_v15, %v414_v14 }
  0x85   :  { %687 = vmatprep.subr.bf16.mxu0 %v686_v17  ;;  %677 = vmatpush3.bf16.msra.mxu1 %v676_v48  ;;  %v416_v17 = vld [vmem:[#allocation10 + $0x60] sm:$0xff] }
  0x86   :  { %710 = vmatprep.subr.bf16.mxu1 %v909_v1  ;;  %v729_v19 = vpack.c.bf16 %v417_v18, %v416_v17 }
  0x88   :  { %689 = vmatpush1.bf16.msra.mxu0 %v688_v25  ;;  %585 = vmatmul.mubr.f32.vlgmr.msra.gmra.mrb[0].mxu1 %v1027_v6  ;;  %v1042_v6 = vld [vmem:[#allocation5] sm:$0xff] }
  0x89   :  { %691 = vmatprep.subr.bf16.mxu0 %v690_v26  ;;  %712 = vmatpush3.bf16.msra.mxu1 %v711_v57 }
  0x8a   :  { %713 = vmatprep.subr.bf16.mxu1 %v909_v1  ;;  %619 = vmatprep.mubr.msk.f32.mxu1 %vm910_vm0, %v908_v0  ;;  %v412_v0 = vld [vmem:[#allocation10 + $0x40] sm:$0xff] }
  0x8b   :  { %v723_v13 = vpack.c.bf16 %v413_v12, %v412_v0 }
  0x8c   :  { %693 = vmatpush1.bf16.msra.mxu0 %v692_v34 }
  0x8d   :  { %695 = vmatprep.subr.bf16.mxu0 %v694_v35  ;;  %715 = vmatpush3.bf16.msra.mxu1 %v714_v3 }
  0x8e   :  { %716 = vmatprep.subr.bf16.mxu1 %v909_v1 }
  0x90   :  { %697 = vmatpush1.bf16.msra.mxu0 %v696_v43 }
  0x91   :  { %699 = vmatprep.subr.bf16.mxu0 %v698_v44  ;;  %718 = vmatpush3.bf16.msra.mxu1 %v717_v8 }
  0x92   :  { %719 = vmatprep.subr.bf16.mxu1 %v909_v1 }
  0x94   :  { %701 = vmatpush1.bf16.msra.mxu0 %v700_v52 }
  0x95   :  { %703 = vmatprep.subr.bf16.mxu0 %v702_v53  ;;  %721 = vmatpush3.bf16.msra.mxu1 %v720_v11 }
  0x96   :  { %722 = vmatprep.subr.bf16.mxu1 %v909_v1 }
  0x98   :  { %705 = vmatpush1.bf16.msra.mxu0 %v704_v61 }
  0x99   :  { %707 = vmatprep.subr.bf16.mxu0 %v706_v62  ;;  %724 = vmatpush3.bf16.msra.mxu1 %v723_v13 }
  0x9a   :  { %725 = vmatprep.subr.bf16.mxu1 %v909_v1 }
  0x9c   :  { %709 = vmatpush1.bf16.msra.mxu0 %v708_v7 }
  0x9d   :  { %727 = vmatpush3.bf16.msra.mxu1 %v726_v16 }
  0x9e   :  { %728 = vmatprep.subr.bf16.mxu1 %v909_v1 }
  0x9f   :  { %376 = vmatmul.mubr.f32.vlgmr.msra.gmra.mrb[0].mxu0 %v1042_v6 }
  0xa1   :  { %730 = vmatpush3.bf16.msra.mxu1 %v729_v19 }
  0xa2   :  { %731 = vmatprep.subr.bf16.mxu1 %v909_v1 }
  0xa5   :  { %733 = vmatpush3.bf16.msra.mxu1 %v732_v22 }
 0x15b   :  { %v275_v25 = vpop.f32.mrb[0].mxu1 }
 0x15c   :  { %v586_v26 = vpop.f32.mrb[1].mxu1 }
 0x172   :  { %v377_v30 = vpop.f32.mrb[0].mxu0 }
 0x173   :  { %v388_v31 = vadd.f32 %v387_v29, %v377_v30  ;;  %v379_v32 = vpop.f32.mrb[1].mxu0 }
 0x174   :  { %v398_v39 = vadd.f32 %v397_v38, %v379_v32 }
 0x175   :  { %v389_v33 = vmul.f32 0.5, %v388_v31 }
 0x176   :  { %v399_v40 = vmul.f32 0.5, %v398_v39 }
 0x177   :  { %751 = vtanh.f32 %v389_v33 }
 0x178   :  { %753 = vtanh.f32 %v399_v40 }
 0x181   :  { %v752_v1 = vpop.eup %751 }
 0x182   :  { %v391_v34 = vadd.f32 1.0, %v752_v1  ;;  %v754_v47 = vpop.eup %753 }
 0x183   :  { %v401_v48 = vadd.f32 1.0, %v754_v47 }
 0x184   :  { %v392_v35 = vmul.f32 0.5, %v391_v34 }
 0x185   :  { %v402_v50 = vmul.f32 0.5, %v401_v48 }
 0x186   :  { %v403_v36 = vmul.f32 %v392_v35, %v1042_v6 }
 0x188   :  { %620 = vmatmul.mubr.f32.vlgmr.msra.gmra.mrb[2].mxu1 %v403_v36 }
 0x25b   :  { %v486_v43 = vpop.f32.mrb[2].mxu1 }
 0x25c   :  { %v490_v44 = vadd.f32 %v486_v43, %v275_v25  ;;  %v621_v45 = vpop.f32.mrb[3].mxu1 }
 0x25e   :  { %v495_v46 = vadd.f32 %v494_v42, %v490_v44 }
 0x260   :  { %755 = vtanh.f32 %v495_v46 }
 0x26a   :  { %v756_v49 = vpop.eup %755 }
 0x26b   :  { %v497_v51 = vsub.f32 %v1042_v6, %v756_v49 }
 0x26d   :  { %v498_v52 = vmul.f32 %v497_v51, %v402_v50 }
 0x26f   :  { %v499_v53 = vadd.f32 %v756_v49, %v498_v52 }
 0x271   :  { %500 = vst [vmem:[#allocation11] sm:$0xff] %v499_v53 }
 0x272   :  { %878 = shalt.err (!%p875_p2)
}
 0x273   :  { %s879_s14 = scalar_lea.hbm %s1073_s6, 128 }
 0x274   :  { %p880_p3 = scmp.ne.s32.totalorder %s1073_s6, %s879_s14  ;;  %p883_p4 = scmp.lt.u32.totalorder %s879_s14, %s1073_s6 }
 0x276   :  { %p885_p5 = pnand %p883_p4, %p880_p3 }
 0x278   :  { %888 = shalt.err (!%p885_p5)
}
 0x279   :  { %510 = dma.vmem_to_hbm [thread:$0]  %s508_s10, 128, %s1073_s6, [#allocation4]  }
 0x27a   :  { %895 = dma.done.wait [#allocation4], 128  }
 0x27b   :  { %896 = vsyncadd [#allocation4], 4294967168 }
 0x27c   :  { %514 = vsyncpa [#allocation3], 1 }
 0x27d   :  { %515 = vsyncpa [#allocation6], 1 }
 0x27e   :  { %516 = vsyncpa [#allocation9], 1 }
 0x27f   :  { %517 = vsyncpa [#allocation4], 1 }

</bundles_post_ra>
